<compile_context>
chip_gen: v6e
topology: v6e:2x2x1
jax: 0.10.0
libtpu: 0.0.40
codegen_flags: <defaults>
</compile_context>

<pallas_src>
import functools

import jax
import jax.numpy as jnp
from jax.experimental import pallas as pl
from jax.experimental.pallas import tpu as pltpu


_INV_SQRT2 = 0.7071067811865476


def _gelu(x):
    # Exact erf-based GELU, matching torch.nn.GELU() default (approximate='none').
    return 0.5 * x * (1.0 + jax.lax.erf(x * _INV_SQRT2))


def _round_up(n, m):
    return ((n + m - 1) // m) * m


def _cdiv(a, b):
    return -(-a // b)


def _choose_batch_tiling(batch, tile_b_max=512):
    """Pick (tile_rows, padded_batch) with >=2 grid steps (even count) when possible."""
    b8 = _round_up(max(batch, 1), 8)
    if b8 <= 8:
        return b8, b8                      # too small to split usefully
    n_tiles = max(2, _cdiv(b8, tile_b_max))
    if n_tiles % 2:                        # even tile count -> both TCs busy on v7x
        n_tiles += 1
    tb = _round_up(_cdiv(b8, n_tiles), 8)
    return tb, tb * n_tiles


def _actor_critic_kernel(x_ref, w1_ref, aw2_ref, cw2_ref, w3_ref, o_ref, *,
                         action_dim, d_in, h_half, approx_recip):
    """Fused actor+critic MLP on one batch tile.

    x_ref   : [TB, d_in]
    w1_ref  : [d_in + 1,  2*h_half]   packed [actor | critic], last row = bias
    aw2_ref : [h_half + 1, h_half]    dense actor layer-2, last row = bias
    cw2_ref : [h_half + 1, h_half]    dense critic layer-2, last row = bias
    w3_ref  : [2*h_half + 1, OUT_PAD] rows [0,h_half) actor->cols[0,A),
                                      rows [h_half,2h_half) critic->col A, last row = bias
    o_ref   : [TB, OUT_PAD]  cols 0..A-1 = softmax probs, col A = value, rest zero
    """
    cdt = w1_ref.dtype                 # MXU operand dtype (f32 parity / bf16 production)
    f32 = jnp.float32

    # ---- layer 1: packed [actor|critic] matmul + GELU (activations in f32) ----
    x = x_ref[...]
    w1 = w1_ref[...]
    h = _gelu(jnp.dot(x, w1[:d_in, :], preferred_element_type=f32)
              + w1[d_in:d_in + 1, :].astype(f32))

    # ---- layer 2: two dense h_half x h_half matmuls (no zero-block FLOPs) ----
    ha = h[:, :h_half].astype(cdt)
    hc = h[:, h_half:].astype(cdt)
    aw2 = aw2_ref[...]
    cw2 = cw2_ref[...]
    ha2 = _gelu(jnp.dot(ha, aw2[:h_half, :], preferred_element_type=f32)
                + aw2[h_half:h_half + 1, :].astype(f32))
    hc2 = _gelu(jnp.dot(hc, cw2[:h_half, :], preferred_element_type=f32)
                + cw2[h_half:h_half + 1, :].astype(f32))

    # ---- layer 3: actor logits (cols [0,A)) + critic value (col A), lane-dense slab ----
    w3 = w3_ref[...]
    z = (jnp.dot(ha2.astype(cdt), w3[:h_half, :], preferred_element_type=f32)
         + jnp.dot(hc2.astype(cdt), w3[h_half:2 * h_half, :], preferred_element_type=f32)
         + w3[2 * h_half:2 * h_half + 1, :].astype(f32))

    # ---- masked softmax over actor columns; value / padding pass through ----
    col = jax.lax.broadcasted_iota(jnp.int32, z.shape, 1)
    is_actor = col < action_dim
    m = jnp.max(jnp.where(is_actor, z, jnp.full_like(z, -jnp.inf)), axis=-1, keepdims=True)
    e = jnp.where(is_actor, jnp.exp(z - m), jnp.zeros_like(z))
    inv_s = pl.reciprocal(jnp.sum(e, axis=-1, keepdims=True), approx=approx_recip)
    probs = e * inv_s
    o_ref[...] = jnp.where(is_actor, probs, z).astype(o_ref.dtype)


def pack_params(params, dtype=jnp.float32):
    """Pack the 12 per-layer tensors into 4 weight slabs (bias as last row).

    Pads D and H up to multiples of 8 so every in-kernel slice stays
    (8,128)-tile aligned.  `dtype=jnp.bfloat16` selects the production MXU path
    (f32 accumulation / elementwise preserved inside the kernel).
    Call once at init / param-update time, not per forward call.
    """
    aw1, ab1 = params["aw1"], params["ab1"]
    aw2, ab2 = params["aw2"], params["ab2"]
    aw3, ab3 = params["aw3"], params["ab3"]
    cw1, cb1 = params["cw1"], params["cb1"]
    cw2, cb2 = params["cw2"], params["cb2"]
    cw3, cb3 = params["cw3"], params["cb3"]

    D, H = aw1.shape
    A = aw3.shape[1]
    d_pad = _round_up(D, 8)
    h_pad = _round_up(H, 8)
    out_pad = max(128, _round_up(A + 1, 128))

    # layer 1: [d_pad + 1, 2*h_pad]  (actor cols [0,h_pad), critic cols [h_pad,2h_pad))
    w1 = jnp.zeros((d_pad + 1, 2 * h_pad), jnp.float32)
    w1 = w1.at[:D, :H].set(aw1)
    w1 = w1.at[:D, h_pad:h_pad + H].set(cw1)
    w1 = w1.at[d_pad, :H].set(ab1.reshape(-1))
    w1 = w1.at[d_pad, h_pad:h_pad + H].set(cb1.reshape(-1))

    # layer 2: two dense [h_pad + 1, h_pad] slabs (bias last row)
    def l2(w, b):
        s = jnp.zeros((h_pad + 1, h_pad), jnp.float32)
        s = s.at[:H, :H].set(w)
        s = s.at[h_pad, :H].set(b.reshape(-1))
        return s
    aw2b = l2(aw2, ab2)
    cw2b = l2(cw2, cb2)

    # layer 3: [2*h_pad + 1, out_pad]
    w3 = jnp.zeros((2 * h_pad + 1, out_pad), jnp.float32)
    w3 = w3.at[:H, :A].set(aw3)
    w3 = w3.at[h_pad:h_pad + H, A:A + 1].set(cw3)
    w3 = w3.at[2 * h_pad, :A].set(ab3.reshape(-1))
    w3 = w3.at[2 * h_pad, A].set(cb3.reshape(-1)[0])

    meta = dict(action_dim=A, input_dim=D, d_pad=d_pad, h_pad=h_pad, out_pad=out_pad)
    return (w1.astype(dtype), aw2b.astype(dtype), cw2b.astype(dtype),
            w3.astype(dtype), meta)


def actor_critic_forward(x, packed, *, tile_b=512, out_dtype=jnp.float32):
    """Returns (action_probs [B, action_dim], values [B, 1])."""
    w1b, aw2b, cw2b, w3b, meta = packed
    A = meta["action_dim"]
    D = meta["input_dim"]
    d_pad, h_pad, out_pad = meta["d_pad"], meta["h_pad"], meta["out_pad"]

    B = x.shape[0]
    assert x.shape[1] == D

    tb, b_pad = _choose_batch_tiling(B, tile_b)

    # Cast at the pallas_call boundary so bf16 also halves the x DMA bytes.
    x = x.astype(w1b.dtype)
    if b_pad != B or d_pad != D:
        x = jnp.pad(x, ((0, b_pad - B), (0, d_pad - D)))

    approx_recip = (w1b.dtype == jnp.bfloat16)   # exact divide on the f32 parity path
    kernel = functools.partial(_actor_critic_kernel, action_dim=A,
                               d_in=d_pad, h_half=h_pad, approx_recip=approx_recip)

    out = pl.pallas_call(
        kernel,
        out_shape=jax.ShapeDtypeStruct((b_pad, out_pad), out_dtype),
        grid_spec=pltpu.PrefetchScalarGridSpec(
            num_scalar_prefetch=0,
            grid=(b_pad // tb,),
            in_specs=[
                pl.BlockSpec((tb, d_pad), lambda i: (i, 0)),
                pl.BlockSpec(w1b.shape, lambda i: (0, 0)),   # weights stay VMEM-resident
                pl.BlockSpec(aw2b.shape, lambda i: (0, 0)),
                pl.BlockSpec(cw2b.shape, lambda i: (0, 0)),
                pl.BlockSpec(w3b.shape, lambda i: (0, 0)),
            ],
            out_specs=pl.BlockSpec((tb, out_pad), lambda i: (i, 0)),
        ),
        compiler_params=pltpu.CompilerParams(
            # batch tiles shard across both TCs on v7x; grid has >=2 steps for B > 8
            dimension_semantics=("parallel",),
            # explicit VMEM budget (>= default on every chip; demo needs < 1 MiB).
            # Raise / tile layer-2 over a K/N grid axis before H grows past ~1.4k
            # (f32) / ~2k (bf16) on v7x.
            vmem_limit_bytes=32 * 1024 * 1024,
        ),
    )(x, w1b, aw2b, cw2b, w3b)

    probs = out[:B, :A]
    value = out[:B, A:A + 1]
    return probs, value


def init_params(key, input_dim, action_dim, hidden_dim):
    """Deterministic init mimicking nn.Linear (uniform +/- 1/sqrt(fan_in))."""
    def linear(k, fan_in, fan_out):
        kw, kb = jax.random.split(k)
        bound = 1.0 / jnp.sqrt(fan_in)
        w = jax.random.uniform(kw, (fan_in, fan_out), jnp.float32, -bound, bound)
        b = jax.random.uniform(kb, (1, fan_out), jnp.float32, -bound, bound)
        return w, b

    keys = jax.random.split(key, 6)
    aw1, ab1 = linear(keys[0], input_dim, hidden_dim)
    aw2, ab2 = linear(keys[1], hidden_dim, hidden_dim)
    aw3, ab3 = linear(keys[2], hidden_dim, action_dim)
    cw1, cb1 = linear(keys[3], input_dim, hidden_dim)
    cw2, cb2 = linear(keys[4], hidden_dim, hidden_dim)
    cw3, cb3 = linear(keys[5], hidden_dim, 1)
    return dict(aw1=aw1, ab1=ab1, aw2=aw2, ab2=ab2, aw3=aw3, ab3=ab3,
                cw1=cw1, cb1=cb1, cw2=cw2, cb2=cb2, cw3=cw3, cb3=cb3)


def reference_forward(x, p):
    """Pure-JAX reference of the unfused PyTorch actor/critic math."""
    h = _gelu(x @ p["aw1"] + p["ab1"])
    h = _gelu(h @ p["aw2"] + p["ab2"])
    probs = jax.nn.softmax(h @ p["aw3"] + p["ab3"], axis=-1)
    g = _gelu(x @ p["cw1"] + p["cb1"])
    g = _gelu(g @ p["cw2"] + p["cb2"])
    value = g @ p["cw3"] + p["cb3"]
    return probs, value


# TODO(synk): Categorical/MultivariateNormal sampling, log_prob and entropy from
# act()/evaluate() (and the continuous-action head) are distribution bookkeeping
# on the MLP outputs with no dense hot path; they stay in plain JAX outside the kernel.

if __name__ == "__main__":
    B, INPUT_DIM, HIDDEN_DIM, ACTION_DIM = 8, 16, 32, 4

    key = jax.random.PRNGKey(0)
    k_x, k_p, k_x2 = jax.random.split(key, 3)
    x = jax.random.normal(k_x, (B, INPUT_DIM), dtype=jnp.float32)
    params = init_params(k_p, INPUT_DIM, ACTION_DIM, HIDDEN_DIM)

    ref_probs, ref_values = reference_forward(x, params)

    # ---- f32 parity path (single tiny tile) ----
    packed = pack_params(params)                     # pack once, outside the hot path
    probs, values = actor_critic_forward(x, packed)
    probs = jax.block_until_ready(probs)
    values = jax.block_until_ready(values)
    assert probs.shape == (B, ACTION_DIM) and values.shape == (B, 1)
    assert jnp.allclose(probs, ref_probs, atol=1e-5, rtol=1e-5)
    assert jnp.allclose(values, ref_values, atol=1e-5, rtol=1e-5)
    assert jnp.allclose(jnp.sum(probs, axis=-1), 1.0, atol=1e-5)

    # ---- multi-tile grid (>=2 parallel steps + batch padding exercised) ----
    B2 = 100
    x2 = jax.random.normal(k_x2, (B2, INPUT_DIM), dtype=jnp.float32)
    probs2, values2 = actor_critic_forward(x2, packed)
    probs2 = jax.block_until_ready(probs2)
    rp2, rv2 = reference_forward(x2, params)
    assert probs2.shape == (B2, ACTION_DIM) and values2.shape == (B2, 1)
    assert jnp.allclose(probs2, rp2, atol=1e-5, rtol=1e-5)
    assert jnp.allclose(values2, rv2, atol=1e-5, rtol=1e-5)

    # ---- bf16 production path (flag-gated; looser tolerance, approx reciprocal) ----
    packed_bf16 = pack_params(params, dtype=jnp.bfloat16)
    probs_b, values_b = actor_critic_forward(x, packed_bf16)
    probs_b = jax.block_until_ready(probs_b)
    assert float(jnp.max(jnp.abs(probs_b - ref_probs))) < 5e-2
    assert float(jnp.max(jnp.abs(values_b - ref_values))) < 1e-1

    print("KERNEL_OK")
</pallas_src>

<mosaic_0001>
module attributes {stable_mosaic.version = 11 : i64} {
  func.func @_actor_critic_kernel(%arg0: i32, %arg1: memref<8x16xf32, #tpu.memory_space<vmem>>, %arg2: memref<17x64xf32, #tpu.memory_space<vmem>>, %arg3: memref<33x32xf32, #tpu.memory_space<vmem>>, %arg4: memref<33x32xf32, #tpu.memory_space<vmem>>, %arg5: memref<65x128xf32, #tpu.memory_space<vmem>>, %arg6: memref<8x128xf32, #tpu.memory_space<vmem>>) attributes {dimension_semantics = [#tpu.dimension_semantics<parallel>], iteration_bounds = array<i64: 1>, scalar_prefetch = 0 : i64, scratch_operands = 0 : i64, tpu.core_type = #tpu.core_type<tc>, window_params = [{transform_indices = @transform_0, window_bounds = array<i64: 8, 16>}, {pipeline_mode = #tpu.pipeline_mode<synchronous>, transform_indices = @transform_1, window_bounds = array<i64: 17, 64>}, {pipeline_mode = #tpu.pipeline_mode<synchronous>, transform_indices = @transform_2, window_bounds = array<i64: 33, 32>}, {pipeline_mode = #tpu.pipeline_mode<synchronous>, transform_indices = @transform_3, window_bounds = array<i64: 33, 32>}, {pipeline_mode = #tpu.pipeline_mode<synchronous>, transform_indices = @transform_4, window_bounds = array<i64: 65, 128>}, {transform_indices = @transform_5, window_bounds = array<i64: 8, 128>}]} {
    %c0 = arith.constant 0 : index
    %c0_0 = arith.constant 0 : index
    %0 = vector.load %arg1[%c0, %c0_0] : memref<8x16xf32, #tpu.memory_space<vmem>>, vector<8x16xf32>
    %c0_1 = arith.constant 0 : index
    %c0_2 = arith.constant 0 : index
    %1 = vector.load %arg2[%c0_1, %c0_2] : memref<17x64xf32, #tpu.memory_space<vmem>>, vector<17x64xf32>
    %2 = vector.extract_strided_slice %1 {offsets = [0, 0], sizes = [16, 64], strides = [1, 1]} : vector<17x64xf32> to vector<16x64xf32>
    %cst = arith.constant dense<0.000000e+00> : vector<8x64xf32>
    %3 = tpu.matmul %0, %2, %cst {dimension_numbers = #tpu.dot_dimension_numbers<[1], [0], [0], [1], [0, 0, 1, 1], [], []>} : vector<8x16xf32>, vector<16x64xf32>, vector<8x64xf32> -> vector<8x64xf32>
    %4 = vector.extract_strided_slice %1 {offsets = [16, 0], sizes = [1, 64], strides = [1, 1]} : vector<17x64xf32> to vector<1x64xf32>
    %5 = vector.broadcast %4 : vector<1x64xf32> to vector<8x64xf32>
    %6 = arith.addf %3, %5 : vector<8x64xf32>
    %cst_3 = arith.constant 5.000000e-01 : f32
    %7 = vector.broadcast %cst_3 : f32 to vector<8x64xf32>
    %8 = arith.mulf %7, %6 : vector<8x64xf32>
    %cst_4 = arith.constant 0.707106769 : f32
    %9 = vector.broadcast %cst_4 : f32 to vector<8x64xf32>
    %10 = arith.mulf %6, %9 : vector<8x64xf32>
    %11 = math.erf %10 : vector<8x64xf32>
    %cst_5 = arith.constant 1.000000e+00 : f32
    %12 = vector.broadcast %cst_5 : f32 to vector<8x64xf32>
    %13 = arith.addf %12, %11 : vector<8x64xf32>
    %14 = arith.mulf %8, %13 : vector<8x64xf32>
    %15 = vector.extract_strided_slice %14 {offsets = [0, 0], sizes = [8, 32], strides = [1, 1]} : vector<8x64xf32> to vector<8x32xf32>
    %16 = vector.extract_strided_slice %14 {offsets = [0, 32], sizes = [8, 32], strides = [1, 1]} : vector<8x64xf32> to vector<8x32xf32>
    %c0_6 = arith.constant 0 : index
    %c0_7 = arith.constant 0 : index
    %17 = vector.load %arg3[%c0_6, %c0_7] : memref<33x32xf32, #tpu.memory_space<vmem>>, vector<33x32xf32>
    %c0_8 = arith.constant 0 : index
    %c0_9 = arith.constant 0 : index
    %18 = vector.load %arg4[%c0_8, %c0_9] : memref<33x32xf32, #tpu.memory_space<vmem>>, vector<33x32xf32>
    %19 = vector.extract_strided_slice %17 {offsets = [0, 0], sizes = [32, 32], strides = [1, 1]} : vector<33x32xf32> to vector<32x32xf32>
    %cst_10 = arith.constant dense<0.000000e+00> : vector<8x32xf32>
    %20 = tpu.matmul %15, %19, %cst_10 {dimension_numbers = #tpu.dot_dimension_numbers<[1], [0], [0], [1], [0, 0, 1, 1], [], []>} : vector<8x32xf32>, vector<32x32xf32>, vector<8x32xf32> -> vector<8x32xf32>
    %21 = vector.extract_strided_slice %17 {offsets = [32, 0], sizes = [1, 32], strides = [1, 1]} : vector<33x32xf32> to vector<1x32xf32>
    %22 = vector.broadcast %21 : vector<1x32xf32> to vector<8x32xf32>
    %23 = arith.addf %20, %22 : vector<8x32xf32>
    %cst_11 = arith.constant 5.000000e-01 : f32
    %24 = vector.broadcast %cst_11 : f32 to vector<8x32xf32>
    %25 = arith.mulf %24, %23 : vector<8x32xf32>
    %cst_12 = arith.constant 0.707106769 : f32
    %26 = vector.broadcast %cst_12 : f32 to vector<8x32xf32>
    %27 = arith.mulf %23, %26 : vector<8x32xf32>
    %28 = math.erf %27 : vector<8x32xf32>
    %cst_13 = arith.constant 1.000000e+00 : f32
    %29 = vector.broadcast %cst_13 : f32 to vector<8x32xf32>
    %30 = arith.addf %29, %28 : vector<8x32xf32>
    %31 = arith.mulf %25, %30 : vector<8x32xf32>
    %32 = vector.extract_strided_slice %18 {offsets = [0, 0], sizes = [32, 32], strides = [1, 1]} : vector<33x32xf32> to vector<32x32xf32>
    %cst_14 = arith.constant dense<0.000000e+00> : vector<8x32xf32>
    %33 = tpu.matmul %16, %32, %cst_14 {dimension_numbers = #tpu.dot_dimension_numbers<[1], [0], [0], [1], [0, 0, 1, 1], [], []>} : vector<8x32xf32>, vector<32x32xf32>, vector<8x32xf32> -> vector<8x32xf32>
    %34 = vector.extract_strided_slice %18 {offsets = [32, 0], sizes = [1, 32], strides = [1, 1]} : vector<33x32xf32> to vector<1x32xf32>
    %35 = vector.broadcast %34 : vector<1x32xf32> to vector<8x32xf32>
    %36 = arith.addf %33, %35 : vector<8x32xf32>
    %cst_15 = arith.constant 5.000000e-01 : f32
    %37 = vector.broadcast %cst_15 : f32 to vector<8x32xf32>
    %38 = arith.mulf %37, %36 : vector<8x32xf32>
    %cst_16 = arith.constant 0.707106769 : f32
    %39 = vector.broadcast %cst_16 : f32 to vector<8x32xf32>
    %40 = arith.mulf %36, %39 : vector<8x32xf32>
    %41 = math.erf %40 : vector<8x32xf32>
    %cst_17 = arith.constant 1.000000e+00 : f32
    %42 = vector.broadcast %cst_17 : f32 to vector<8x32xf32>
    %43 = arith.addf %42, %41 : vector<8x32xf32>
    %44 = arith.mulf %38, %43 : vector<8x32xf32>
    %c0_18 = arith.constant 0 : index
    %c0_19 = arith.constant 0 : index
    %45 = vector.load %arg5[%c0_18, %c0_19] : memref<65x128xf32, #tpu.memory_space<vmem>>, vector<65x128xf32>
    %46 = vector.extract_strided_slice %45 {offsets = [0, 0], sizes = [32, 128], strides = [1, 1]} : vector<65x128xf32> to vector<32x128xf32>
    %cst_20 = arith.constant dense<0.000000e+00> : vector<8x128xf32>
    %47 = tpu.matmul %31, %46, %cst_20 {dimension_numbers = #tpu.dot_dimension_numbers<[1], [0], [0], [1], [0, 0, 1, 1], [], []>} : vector<8x32xf32>, vector<32x128xf32>, vector<8x128xf32> -> vector<8x128xf32>
    %48 = vector.extract_strided_slice %45 {offsets = [32, 0], sizes = [32, 128], strides = [1, 1]} : vector<65x128xf32> to vector<32x128xf32>
    %cst_21 = arith.constant dense<0.000000e+00> : vector<8x128xf32>
    %49 = tpu.matmul %44, %48, %cst_21 {dimension_numbers = #tpu.dot_dimension_numbers<[1], [0], [0], [1], [0, 0, 1, 1], [], []>} : vector<8x32xf32>, vector<32x128xf32>, vector<8x128xf32> -> vector<8x128xf32>
    %50 = arith.addf %47, %49 : vector<8x128xf32>
    %51 = vector.extract_strided_slice %45 {offsets = [64, 0], sizes = [1, 128], strides = [1, 1]} : vector<65x128xf32> to vector<1x128xf32>
    %52 = vector.broadcast %51 : vector<1x128xf32> to vector<8x128xf32>
    %53 = arith.addf %50, %52 : vector<8x128xf32>
    %54 = tpu.iota {dimensions = array<i32: 1>} : vector<8x128xi32>
    %c4_i32 = arith.constant 4 : i32
    %55 = vector.broadcast %c4_i32 : i32 to vector<8x128xi32>
    %56 = arith.cmpi slt, %54, %55 : vector<8x128xi32>
    %cst_22 = arith.constant 0xFF800000 : f32
    %57 = vector.broadcast %cst_22 : f32 to vector<8x128xf32>
    %58 = arith.select %56, %53, %57 : vector<8x128xi1>, vector<8x128xf32>
    %cst_23 = arith.constant dense<0xFF800000> : vector<8xf32>
    %59 = vector.multi_reduction <maximumf>, %58, %cst_23 [1] : vector<8x128xf32> to vector<8xf32>
    %60 = vector.shape_cast %59 : vector<8xf32> to vector<8x1xf32>
    %61 = vector.broadcast %60 : vector<8x1xf32> to vector<8x128xf32>
    %62 = arith.subf %53, %61 : vector<8x128xf32>
    %63 = math.exp %62 : vector<8x128xf32>
    %cst_24 = arith.constant 0.000000e+00 : f32
    %64 = vector.broadcast %cst_24 : f32 to vector<8x128xf32>
    %65 = arith.select %56, %63, %64 : vector<8x128xi1>, vector<8x128xf32>
    %cst_25 = arith.constant dense<0.000000e+00> : vector<8xf32>
    %66 = vector.multi_reduction <add>, %65, %cst_25 [1] : vector<8x128xf32> to vector<8xf32>
    %67 = vector.shape_cast %66 : vector<8xf32> to vector<8x1xf32>
    %68 = tpu.reciprocal %67 : vector<8x1xf32> -> vector<8x1xf32>
    %69 = vector.broadcast %68 : vector<8x1xf32> to vector<8x128xf32>
    %70 = arith.mulf %65, %69 : vector<8x128xf32>
    %71 = arith.select %56, %70, %53 : vector<8x128xi1>, vector<8x128xf32>
    %c0_26 = arith.constant 0 : index
    %c0_27 = arith.constant 0 : index
    %72 = vector.load %arg6[%c0_26, %c0_27] : memref<8x128xf32, #tpu.memory_space<vmem>>, vector<8x128xf32>
    tpu.vector_store %arg6[%c0_26, %c0_27], %71 {strides = array<i32>} : memref<8x128xf32, #tpu.memory_space<vmem>>, vector<8x128xf32>,
    return
  }
  func.func @transform_0(%arg0: i32) -> (i32, i32) {
    %c0_i32 = arith.constant 0 : i32
    %c0_i32_0 = arith.constant 0 : i32
    return %arg0, %c0_i32 : i32, i32
  }
  func.func @transform_1(%arg0: i32) -> (i32, i32) {
    %c0_i32 = arith.constant 0 : i32
    %c0_i32_0 = arith.constant 0 : i32
    %c0_i32_1 = arith.constant 0 : i32
    return %c0_i32, %c0_i32_0 : i32, i32
  }
  func.func @transform_2(%arg0: i32) -> (i32, i32) {
    %c0_i32 = arith.constant 0 : i32
    %c0_i32_0 = arith.constant 0 : i32
    %c0_i32_1 = arith.constant 0 : i32
    return %c0_i32, %c0_i32_0 : i32, i32
  }
  func.func @transform_3(%arg0: i32) -> (i32, i32) {
    %c0_i32 = arith.constant 0 : i32
    %c0_i32_0 = arith.constant 0 : i32
    %c0_i32_1 = arith.constant 0 : i32
    return %c0_i32, %c0_i32_0 : i32, i32
  }
  func.func @transform_4(%arg0: i32) -> (i32, i32) {
    %c0_i32 = arith.constant 0 : i32
    %c0_i32_0 = arith.constant 0 : i32
    %c0_i32_1 = arith.constant 0 : i32
    return %c0_i32, %c0_i32_0 : i32, i32
  }
  func.func @transform_5(%arg0: i32) -> (i32, i32) {
    %c0_i32 = arith.constant 0 : i32
    %c0_i32_0 = arith.constant 0 : i32
    return %arg0, %c0_i32 : i32, i32
  }
}

</mosaic_0001>

<bundles_post_ra>
// kernel: tpu_custom_call.1
= control target key start
LH: loop header
LB: loop body
LE: loop exit
PB: predicated region body
PF: predicated region fallthrough
CT: control target
= control target key end

     0   :  { %v593_v1 = vmov 0.0   ;;  %vm594_vm0 = vmmov 0   ;;  %s734_s0 = inlined_call_operand.vmem [shape: f32[8,16], index: 0, kind: input, shape index: {}]   ;;  %s735_s1 = inlined_call_operand.vmem [shape: f32[17,64], index: 1, kind: input, shape index: {}]   ;;  %s736_s2 = inlined_call_operand.vmem [shape: f32[33,32], index: 2, kind: input, shape index: {}]   ;;  %s737_s3 = inlined_call_operand.vmem [shape: f32[33,32], index: 3, kind: input, shape index: {}]   ;;  %s738_s4 = inlined_call_operand.vmem [shape: f32[65,128], index: 4, kind: input, shape index: {}]   ;;  %s739_s5 = inlined_call_operand.hbm [shape: f32[8,128], index: 5, kind: output, shape index: {}]  }
   0x1   :  { %v23_v0 = vld [vmem:[%s735_s1 + $0x8] sm:$0xff]  ;;  %506 = vmatprep.subr.mxu0 %v593_v1  ;;  %v22_v2 = vld [vmem:[%s735_s1] sm:$0xff]  ;;  %510 = vmatprep.mubr.msk.f32.mxu0 %vm594_vm0, %v593_v1 }
   0x2   :  { %10 = vsyncpa [#allocation3], 0  ;;  %507 = vmatpush3.msra.mxu0 %v23_v0  ;;  %v21_v3 = vld [vmem:[%s734_s0] sm:$0xff]  ;;  %vm29_vm1 = vcmask 130048   ;;  %513 = vmatprep.subr.mxu1 %v593_v1  ;;  %v111_v4 = vld [vmem:[%s736_s2 + $0x18] sm:$0xff]  ;;  %vm122_vm2 = vcmask 261120   ;;  %v444_v50 = vlaneseq }
   0x3   :  { %508 = vmatprep.subr.mxu0 %v593_v1  ;;  %521 = vmatprep.mubr.msk.f32.mxu1 %vm594_vm0, %v593_v1  ;;  %v110_v5 = vld [vmem:[%s736_s2 + $0x10] sm:$0xff]  ;;  %v109_v6 = vld [vmem:[%s736_s2 + $0x8] sm:$0xff]  ;;  %v108_v7 = vld [vmem:[%s736_s2] sm:$0xff]  ;;  %s595_s16 = smov 96  }
   0x4   :  { %509 = vmatpush3.msra.mxu0 %v22_v2  ;;  %514 = vmatpush3.msra.mxu1 %v111_v4  ;;  %v116_v8 = vld [vmem:[%s737_s3 + $0x18] sm:$0xff]  ;;  %v115_v9 = vld [vmem:[%s737_s3 + $0x10] sm:$0xff]  ;;  %v114_v10 = vld [vmem:[%s737_s3 + $0x8] sm:$0xff]  ;;  %v445_v51 = vand.u32 127, %v444_v50 }
   0x5   :  { %511 = vmatmul.mubr.msk.f32.vlgmr.msra.gmra.mxu0 %vm29_vm1, %v21_v3  ;;  %524 = vmatprep.subr.mxu0 %v593_v1  ;;  %v113_v11 = vld [vmem:[%s737_s3] sm:$0xff]  ;;  %v474_v12 = vld [vmem:[%s735_s1 + $0x10] ss:$0 sm:$0xff]  ;;  %v287_v21 = vld [vmem:[%s738_s4 + $0x18] sm:$0xff] }
   0x6   :  { %532 = vmatprep.mubr.msk.f32.mxu0 %vm594_vm0, %v593_v1  ;;  %515 = vmatprep.subr.mxu1 %v593_v1  ;;  %v286_v23 = vld [vmem:[%s738_s4 + $0x10] sm:$0xff]  ;;  %v285_v24 = vld [vmem:[%s738_s4 + $0x8] sm:$0xff]  ;;  %v284_v25 = vld [vmem:[%s738_s4] sm:$0xff]  ;;  %vm446_vm3 = vcmp.lt.s32.totalorder %v445_v51, 4 }
   0x7   :  { %516 = vmatpush3.msra.mxu1 %v110_v5  ;;  %525 = vmatpush3.msra.mxu0 %v116_v8  ;;  %v476_v26 = vld [vmem:[%s736_s2 + $0x20] ss:$0 sm:$0xff]  ;;  %v291_v30 = vld [vmem:[%s738_s4 + $0x38] sm:$0xff]  ;;  %v290_v32 = vld [vmem:[%s738_s4 + $0x30] sm:$0xff] }
   0x8   :  { %517 = vmatprep.subr.mxu1 %v593_v1  ;;  %526 = vmatprep.subr.mxu0 %v593_v1  ;;  %v289_v33 = vld [vmem:[%s738_s4 + $0x28] sm:$0xff]  ;;  %v288_v34 = vld [vmem:[%s738_s4 + $0x20] sm:$0xff] }
   0x9   :  { %518 = vmatpush3.msra.mxu1 %v109_v6  ;;  %527 = vmatpush3.msra.mxu0 %v115_v9  ;;  %v478_v39 = vld [vmem:[%s737_s3 + $0x20] ss:$0 sm:$0xff]  ;;  %s596_s3 = smov [#allocation2]  }
   0xa   :  { %519 = vmatprep.subr.mxu1 %v593_v1  ;;  %528 = vmatprep.subr.mxu0 %v593_v1  ;;  %v482_v52 = vld [vmem:[%s738_s4 + $0x40] ss:$0 sm:$0xff]  ;;  %s466_s4 = sshll.u32 %s596_s3, 4  ;;  %s467_s4 = int_to_ptr.vmem [resolvable:$true] %s466_s4 }
   0xb   :  { %520 = vmatpush3.msra.mxu1 %v108_v7  ;;  %529 = vmatpush3.msra.mxu0 %v114_v10  ;;  %s571_s11 = scalar_lea.vmem %s467_s4, 128  ;;  %p576_p1 = scmp.lt.s32.totalorder %s467_s4, %s467_s4 }
   0xc   :  { %535 = vmatprep.subr.mxu1 %v593_v1  ;;  %530 = vmatprep.subr.mxu0 %v593_v1  ;;  %p572_p0 = scmp.ne.s32.totalorder %s467_s4, %s571_s11  ;;  %p577_p2 = scmp.lt.s32.totalorder %s571_s11, %s571_s11 }
   0xd   :  { %531 = vmatpush3.msra.mxu0 %v113_v11 }
   0xe   :  { %546 = vmatprep.subr.mxu0 %v593_v1  ;;  %p578_p3 = por %p577_p2, %p576_p1 }
  0x10   :  { %p579_p4 = pnand %p578_p3, %p572_p0 }
  0xc5   :  { %v99_v13 = vpop.f32.mrf.mxu0 }
  0xc6   :  { %v100_v14 = vadd.f32 %v474_v12, %v99_v13 }
  0xc7   :  { %v512_v15 = vpop.f32.mrf.mxu0 }
  0xc8   :  { %v104_v16 = vmul.f32 0.70710677, %v100_v14  ;;  %v103_v18 = vmul.f32 0.5, %v100_v14 }
  0xca   :  { %561 = verf.f32 %v104_v16 }
  0xd7   :  { %v562_v17 = vpop.eup %561 }
  0xd8   :  { %v106_v19 = vadd.f32 1.0, %v562_v17 }
  0xda   :  { %v107_v20 = vmul.f32 %v106_v19, %v103_v18 }
  0xdc   :  { %205 = vrot.lane.b32.xlu0 %v107_v20, %s595_s16  ;;  %522 = vmatmul.mubr.msk.f32.vlgmr.msra.gmra.mxu1 %vm122_vm2, %v107_v20 }
  0xdd   :  { %543 = vmatprep.mubr.msk.f32.mxu1 %vm594_vm0, %v593_v1  ;;  %536 = vmatpush3.msra.mxu1 %v291_v30 }
  0xde   :  { %537 = vmatprep.subr.mxu1 %v593_v1 }
  0xdf   :  { %538 = vmatpush3.msra.mxu1 %v290_v32 }
  0xe0   :  { %539 = vmatprep.subr.mxu1 %v593_v1 }
  0xe1   :  { %540 = vmatpush3.msra.mxu1 %v289_v33 }
  0xe2   :  { %541 = vmatprep.subr.mxu1 %v593_v1 }
  0xe3   :  { %542 = vmatpush3.msra.mxu1 %v288_v34 }
 0x14e   :  { %v206_v22 = vpop.permute.xlu0 %205 }
 0x14f   :  { %533 = vmatmul.mubr.msk.f32.vlgmr.msra.gmra.mxu0 %vm122_vm2, %v206_v22 }
 0x150   :  { %547 = vmatpush3.msra.mxu0 %v287_v21  ;;  %554 = vmatprep.mubr.msk.f32.mxu0 %vm594_vm0, %v593_v1 }
 0x151   :  { %548 = vmatprep.subr.mxu0 %v593_v1 }
 0x152   :  { %549 = vmatpush3.msra.mxu0 %v286_v23 }
 0x153   :  { %550 = vmatprep.subr.mxu0 %v593_v1 }
 0x154   :  { %551 = vmatpush3.msra.mxu0 %v285_v24 }
 0x155   :  { %552 = vmatprep.subr.mxu0 %v593_v1 }
 0x156   :  { %553 = vmatpush3.msra.mxu0 %v284_v25 }
 0x19c   :  { %v192_v27 = vpop.f32.mrf.mxu1 }
 0x19d   :  { %v193_v28 = vadd.f32 %v476_v26, %v192_v27 }
 0x19e   :  { %v523_v29 = vpop.f32.mrf.mxu1 }
 0x19f   :  { %v197_v31 = vmul.f32 0.70710677, %v193_v28  ;;  %v196_v36 = vmul.f32 0.5, %v193_v28 }
 0x1a1   :  { %563 = verf.f32 %v197_v31 }
 0x1ae   :  { %v564_v35 = vpop.eup %563 }
 0x1af   :  { %v199_v37 = vadd.f32 1.0, %v564_v35 }
 0x1b1   :  { %v200_v38 = vmul.f32 %v199_v37, %v196_v36 }
 0x1b3   :  { %555 = vmatmul.mubr.msk.f32.vlgmr.msra.gmra.mxu0 %vm122_vm2, %v200_v38 }
 0x20f   :  { %v275_v40 = vpop.f32.mrf.mxu0 }
 0x210   :  { %v276_v41 = vadd.f32 %v478_v39, %v275_v40 }
 0x211   :  { %v534_v42 = vpop.f32.mrf.mxu0 }
 0x212   :  { %v280_v43 = vmul.f32 0.70710677, %v276_v41  ;;  %v279_v45 = vmul.f32 0.5, %v276_v41 }
 0x214   :  { %565 = verf.f32 %v280_v43 }
 0x221   :  { %v566_v44 = vpop.eup %565 }
 0x222   :  { %v282_v46 = vadd.f32 1.0, %v566_v44 }
 0x224   :  { %v283_v47 = vmul.f32 %v282_v46, %v279_v45 }
 0x226   :  { %544 = vmatmul.mubr.msk.f32.vlgmr.msra.gmra.mxu1 %vm122_vm2, %v283_v47 }
 0x273   :  { %v435_v48 = vpop.f32.mrf.mxu0 }
 0x275   :  { %v556_v49 = vpop.f32.mrf.mxu0 }
 0x2e6   :  { %v362_v53 = vpop.f32.mrf.mxu1 }
 0x2e7   :  { %v436_v54 = vadd.f32 %v435_v48, %v362_v53 }
 0x2e8   :  { %v545_v55 = vpop.f32.mrf.mxu1 }
 0x2e9   :  { %v443_v56 = vadd.f32 %v482_v52, %v436_v54 }
 0x2eb   :  { %v447_v57 = vsel %vm446_vm3, %v443_v56, -inf }
 0x2ec   :  { %448 = vmax.xlane.f32.xlu0 %v447_v57 }
 0x375   :  { %v449_v58 = vpop.xlane.xlu0 %448 }
 0x376   :  { %v450_v59 = vsub.f32 %v443_v56, %v449_v58 }
 0x378   :  { %v451_v60 = vmul.f32 1.442695, %v450_v59 }
 0x37a   :  { %567 = vpow2.f32 %v451_v60 }
 0x387   :  { %v568_v61 = vpop.eup %567 }
 0x388   :  { %v453_v62 = vsel %vm446_vm3, %v568_v61, 0.0 }
 0x389   :  { %454 = vadd.xlane.f32.xlu1 %v453_v62 }
 0x412   :  { %v455_v63 = vpop.xlane.xlu1 %454 }
 0x413   :  { %569 = vrcp.f32 %v455_v63 }
 0x420   :  { %v570_v0 = vpop.eup %569 }
 0x421   :  { %v457_v1 = vmul.f32 %v570_v0, %v453_v62 }
 0x423   :  { %v458_v2 = vsel %vm446_vm3, %v457_v1, %v443_v56 }
 0x424   :  { %459 = vst [vmem:[#allocation2] sm:$0xff] %v458_v2 }
 0x425   :  { %582 = shalt.err (!%p579_p4)
}
 0x426   :  { %469 = dma.vmem_to_hbm [thread:$0]  %s467_s4, 128, %s739_s5, [#allocation3]  }
 0x427   :  { %591 = dma.done.wait [#allocation3], 128  }
 0x428   :  { %592 = vsyncadd [#allocation3], 4294967168 }
 0x429   :  { %473 = vsyncpa [#allocation3], 1 }

</bundles_post_ra>
